<compile_context>
chip_gen: v5e
topology: v5e:2x2
jax: 0.10.0
libtpu: 0.0.40
codegen_flags: <defaults>
</compile_context>

<pallas_src>
import functools
import math

import jax
import jax.numpy as jnp
from jax.experimental import pallas as pl
from jax.experimental.pallas import tpu as pltpu

_LANE = 128
# Below this many input bytes, grid/pipeline overhead dominates a memory-bound
# elementwise op -> use a single ungridded block instead of a tiled grid.
# Kept low on purpose so 1-4 MiB activations still take the gridded path and
# the "parallel" grid axis can shard steps across both v7x TensorCores.
_SMALL_BYTES = 512 * 1024


def _modified_tanh_kernel(x_ref, o_ref, *, alpha):
    # Compute in f32 regardless of storage dtype (EUP tanh + the alpha-mul sit
    # in slack VLIW slots for a memory-bound kernel), cast back on store.
    x = x_ref[...].astype(jnp.float32)
    o_ref[...] = jnp.tanh(alpha * x).astype(o_ref.dtype)


def _round_up(a, b):
    return ((a + b - 1) // b) * b


def _choose_cols(n):
    # Widest lane-dense slab width that divides n exactly (no pad copy).
    for c in (1024, 512, 256, _LANE):
        if n % c == 0:
            return c
    return None


def _vmem_budget_bytes():
    # Generation-aware scoped-VMEM ceiling: half of physical VMEM, capped at
    # 64 MiB.  v5e/v6e (128 MiB physical) -> 64 MiB budget, which lets >7 MiB
    # tiles through; v7x (64 MiB physical per TC) -> 32 MiB budget.
    try:
        phys = pltpu.get_tpu_info().vmem_capacity_bytes
    except Exception:  # pragma: no cover - conservative default (v7x per-TC)
        phys = 64 << 20
    return min(phys // 2, 64 << 20)


def modified_tanh(x, upper_bound=0.9, *, block_rows=None, donate=False):
    """tanh(alpha * x) with alpha derived from upper_bound (PyTorch ModifiedTanh)."""
    if upper_bound == 1:
        upper_bound = 0.95
    alpha = 1.0 / (2.0 * upper_bound) * math.log(
        (1.0 + upper_bound) / (1.0 - upper_bound))

    orig_shape = x.shape
    orig_dtype = x.dtype
    itemsize = jnp.dtype(orig_dtype).itemsize
    n = x.size
    if n == 0:
        return x
    kernel = functools.partial(_modified_tanh_kernel, alpha=alpha)

    # Advisory hint so XLA schedules this memory-bound custom call correctly
    # inside larger jits.
    cost = pl.CostEstimate(flops=n, transcendentals=n,
                           bytes_accessed=2 * n * itemsize)

    # ---- Small path: single ungridded block (whole array resident in VMEM) ----
    if n * itemsize <= _SMALL_BYTES:
        rows = pl.cdiv(n, _LANE)
        padded = rows * _LANE
        x_flat = x.reshape(-1)
        if padded != n:
            # Tiny (<128-element) pad keeps the slab sublane/lane-dense
            # ((rows,128) uses unmasked full-width vst; a (1,n) slab would
            # waste 7 of 8 sublanes per vreg).
            x_flat = jnp.pad(x_flat, (0, padded - n))
        x2d = x_flat.reshape(rows, _LANE)
        out2d = pl.pallas_call(
            kernel,
            out_shape=jax.ShapeDtypeStruct((rows, _LANE), orig_dtype),
            cost_estimate=cost,
        )(x2d)
        out_flat = out2d.reshape(-1)
        if padded != n:
            out_flat = out_flat[:n]
        return out_flat.reshape(orig_shape)

    # ---- Large path: wide lane-dense slab, ~4 MiB blocks, cdiv grid ----
    cols = _choose_cols(n)
    if cols is None:
        # n not a multiple of 128 on a large tensor: a full-array pad + output
        # slice would each re-read/re-write the whole tensor (~3x HBM traffic
        # for a memory-bound op). Let XLA fuse a plain tanh instead.
        return jnp.tanh(alpha * x.astype(jnp.float32)).astype(orig_dtype)

    rows = n // cols          # exact: cols divides n, no padding needed
    x2d = x.reshape(rows, cols)

    # Sublane packing is dtype-aware: 8 rows/vreg for 4-byte, 16 for 2-byte,
    # 32 for 1-byte dtypes.
    sub = max(8, 32 // itemsize)
    if block_rows is None:
        target_bytes = 4 << 20  # ~4 MiB blocks: ~86%+ of HBM roofline
        tr = max(sub, (target_bytes // (cols * itemsize)) // sub * sub)
    else:
        tr = max(sub, _round_up(block_rows, sub))
    tr = min(tr, _round_up(rows, sub))

    # Keep (in + out) x double-buffering + headroom inside the per-generation
    # VMEM budget; shrink the tile rather than overshoot (matters on v7x).
    budget = _vmem_budget_bytes()
    max_block = (budget - (4 << 20)) // 4
    max_tr = max(sub, (max_block // (cols * itemsize)) // sub * sub)
    tr = min(tr, max_tr)

    block_bytes = tr * cols * itemsize
    vmem_limit = min(max(4 * block_bytes + (4 << 20), 16 << 20), budget)

    # Fixed tile + ceiling-divide grid; Pallas masks the ragged last block.
    grid = (pl.cdiv(rows, tr),)

    # TODO(synk): if an xprof trace on v7x shows exposed DMA between steps at
    # 4 MiB tiles, add pipeline_mode=pl.Buffered(3) to the in/out specs.
    out2d = pl.pallas_call(
        kernel,
        out_shape=jax.ShapeDtypeStruct((rows, cols), orig_dtype),
        grid_spec=pltpu.PrefetchScalarGridSpec(
            num_scalar_prefetch=0,
            grid=grid,
            in_specs=[pl.BlockSpec((tr, cols), lambda i: (i, 0))],
            out_specs=pl.BlockSpec((tr, cols), lambda i: (i, 0)),
        ),
        compiler_params=pltpu.CompilerParams(
            dimension_semantics=("parallel",),
            vmem_limit_bytes=vmem_limit,
        ),
        cost_estimate=cost,
        # Elementwise with identical in/out tiling is safe to do in place;
        # only saves anything if the caller actually donates x.
        input_output_aliases={0: 0} if donate else {},
    )(x2d)

    return out2d.reshape(orig_shape)


if __name__ == "__main__":
    key = jax.random.PRNGKey(0)
    k_small, k_odd, k_big, k_frac = jax.random.split(key, 4)

    ub = 0.9
    alpha = 1.0 / (2.0 * ub) * math.log((1.0 + ub) / (1.0 - ub))

    # Small NCHW activation -> single ungridded block path (n % 128 == 0).
    x_small = jax.random.normal(k_small, (2, 4, 16, 16), dtype=jnp.float32)
    out_small = jax.block_until_ready(modified_tanh(x_small, upper_bound=ub))
    ref_small = jnp.tanh(alpha * x_small)
    assert out_small.shape == x_small.shape and out_small.dtype == x_small.dtype
    assert jnp.allclose(out_small, ref_small, atol=1e-5, rtol=1e-5)

    # Small, size NOT a multiple of 128 -> sublane-dense (rows,128) tiny-pad path.
    x_odd = jax.random.normal(k_odd, (3, 5, 7), dtype=jnp.float32)
    out_odd = jax.block_until_ready(modified_tanh(x_odd, upper_bound=ub))
    ref_odd = jnp.tanh(alpha * x_odd)
    assert out_odd.shape == x_odd.shape and out_odd.dtype == x_odd.dtype
    assert jnp.allclose(out_odd, ref_odd, atol=1e-5, rtol=1e-5)

    # Moderate activation -> gridded path. block_rows=64 forces a multi-block
    # grid with a ragged last block (200 rows of 1024, 64-row tiles -> 4 steps).
    x_big = jax.random.normal(k_big, (2, 4, 160, 160), dtype=jnp.float32)
    out_big = jax.block_until_ready(
        modified_tanh(x_big, upper_bound=ub, block_rows=64))
    ref_big = jnp.tanh(alpha * x_big)
    assert out_big.shape == x_big.shape and out_big.dtype == x_big.dtype
    assert jnp.allclose(out_big, ref_big, atol=1e-5, rtol=1e-5)

    # Same input through the default (~4 MiB auto-tile) gridded path.
    out_auto = jax.block_until_ready(modified_tanh(x_big, upper_bound=ub))
    assert jnp.allclose(out_auto, ref_big, atol=1e-5, rtol=1e-5)

    # Gridded path with input/output aliasing requested.
    out_alias = jax.block_until_ready(
        modified_tanh(x_big, upper_bound=ub, donate=True))
    assert jnp.allclose(out_alias, ref_big, atol=1e-5, rtol=1e-5)

    # Large tensor whose size is not a multiple of 128 -> XLA fallback (no
    # full-array pad/slice copies).
    x_frac = jax.random.normal(k_frac, (131, 1027), dtype=jnp.float32)
    out_frac = jax.block_until_ready(modified_tanh(x_frac, upper_bound=ub))
    ref_frac = jnp.tanh(alpha * x_frac)
    assert jnp.allclose(out_frac, ref_frac, atol=1e-5, rtol=1e-5)

    print("KERNEL_OK")
</pallas_src>

<mosaic_0001>
module attributes {stable_mosaic.version = 11 : i64} {
  func.func @_modified_tanh_kernel(%arg0: memref<16x128xf32, #tpu.memory_space<vmem>>, %arg1: memref<16x128xf32, #tpu.memory_space<vmem>>) attributes {dimension_semantics = [], scalar_prefetch = 0 : i64, scratch_operands = 0 : i64, tpu.core_type = #tpu.core_type<tc>} {
    %c0 = arith.constant 0 : index
    %c0_0 = arith.constant 0 : index
    %0 = vector.load %arg0[%c0, %c0_0] : memref<16x128xf32, #tpu.memory_space<vmem>>, vector<16x128xf32>
    %cst = arith.constant 1.63579941 : f32
    %1 = vector.broadcast %cst : f32 to vector<16x128xf32>
    %2 = arith.mulf %1, %0 : vector<16x128xf32>
    %3 = math.tanh %2 : vector<16x128xf32>
    %c0_1 = arith.constant 0 : index
    %c0_2 = arith.constant 0 : index
    %4 = vector.load %arg1[%c0_1, %c0_2] : memref<16x128xf32, #tpu.memory_space<vmem>>, vector<16x128xf32>
    tpu.vector_store %arg1[%c0_1, %c0_2], %3 {strides = array<i32>} : memref<16x128xf32, #tpu.memory_space<vmem>>, vector<16x128xf32>,
    return
  }
}

</mosaic_0001>

<bundles_post_ra>
// kernel: tpu_custom_call.1
= control target key start
LH: loop header
LB: loop body
LE: loop exit
PB: predicated region body
PF: predicated region fallthrough
CT: control target
= control target key end

     0   :  { %6 = vsyncpa [#allocation3], 0  ;;  %s132_s0 = inlined_call_operand.hbm [shape: f32[16,128], index: 0, kind: input, shape index: {}]   ;;  %s133_s1 = inlined_call_operand.hbm [shape: f32[16,128], index: 1, kind: output, shape index: {}]  }
   0x1   :  { %7 = vsyncpa [#allocation4], 0  ;;  %s12_s8 = sshll.u32 %s132_s0, 4  ;;  %s112_s9 = smov [#allocation2]   ;;  %s13_s8 = int_to_ptr.hbm [resolvable:$true] %s12_s8 }
   0x2   :  { %s14_s10 = sshll.u32 %s112_s9, 4  ;;  %s113_s11 = smov 128   ;;  %s15_s10 = int_to_ptr.vmem [resolvable:$true] %s14_s10 }
   0x3   :  { %s114_s12 = smov 8  }
   0x4   :  { %20 = dma.hbm_to_vmem [thread:$0]  %s13_s8, 256, %s15_s10, [#allocation3], %s113_s11, %s113_s11, %s114_s12  }
   0x5   :  { %108 = dma.done.wait [#allocation3], 256  }
   0x6   :  { %109 = vsyncadd [#allocation3], 4294967040  ;;  %v25_v0 = vld [vmem:[#allocation2] sm:$0xff]  ;;  %v26_v1 = vld [vmem:[#allocation2 + $0x8] sm:$0xff]  ;;  %s115_s13 = smov [#allocation5]   ;;  %s39_s0 = sshll.u32 %s133_s1, 4  ;;  %s40_s0 = int_to_ptr.hbm [resolvable:$true] %s39_s0 }
   0x7   :  { %v27_v2 = vmul.f32 1.6357994, %v25_v0  ;;  %v28_v3 = vmul.f32 1.6357994, %v26_v1  ;;  %s37_s14 = sshll.u32 %s115_s13, 4  ;;  %s38_s14 = int_to_ptr.vmem [resolvable:$true] %s37_s14 }
   0x9   :  { %56 = vtanh.f32 %v27_v2 }
   0xa   :  { %58 = vtanh.f32 %v28_v3 }
   0xf   :  { %v57_v4 = vpop.eup %56 }
  0x10   :  { %v59_v5 = vpop.eup %58  ;;  %31 = vst [vmem:[#allocation5] sm:$0xff] %v57_v4 }
  0x11   :  { %32 = vst [vmem:[#allocation5 + $0x8] sm:$0xff] %v59_v5 }
  0x12   :  { %45 = dma.vmem_to_hbm [thread:$0]  %s38_s14, 256, %s40_s0, [#allocation4], %s113_s11, %s113_s11, %s114_s12  }
  0x13   :  { %110 = dma.done.wait [#allocation4], 256  }
  0x14   :  { %111 = vsyncadd [#allocation4], 4294967040 }
  0x15   :  { %50 = vsyncpa [#allocation3], 1 }
  0x16   :  { %51 = vsyncpa [#allocation4], 1 }

</bundles_post_ra>
